<compile_context>
chip_gen: v7x
topology: tpu7x:2x2x1
jax: 0.10.0
libtpu: 0.0.40
codegen_flags: <defaults>
</compile_context>

<pallas_src>
import functools

import numpy as np
import jax
import jax.numpy as jnp
from jax.experimental import pallas as pl
from jax.experimental.pallas import tpu as pltpu


def _round_up(n, m):
    return ((n + m - 1) // m) * m


def _se_kernel(x_ref, pool_ref, w1t_ref, w2t_ref, repl_ref, o_ref):
    # --- squeeze: per-channel mean over L via pooling matmul (MXU, f32 acc) ---
    y = jnp.dot(x_ref[...], pool_ref[...], preferred_element_type=jnp.float32)   # (Bt, C)

    # --- excitation: Linear(C->h) -> ReLU -> Linear(h->C) -> Sigmoid, tiny, f32 ---
    hid = jnp.maximum(
        jnp.dot(y, w1t_ref[...], preferred_element_type=jnp.float32), 0.0)       # (Bt, h)
    g = jax.nn.sigmoid(
        jnp.dot(hid, w2t_ref[...], preferred_element_type=jnp.float32))          # (Bt, C)

    # --- replicate gate along L with a 0/1 matmul; output directly in x dtype ---
    gate = jnp.dot(g.astype(repl_ref.dtype), repl_ref[...],
                   preferred_element_type=o_ref.dtype)                           # (Bt, C*L)

    # --- rescale: re-stream x from VMEM; full-width lane-dense store ---
    o_ref[...] = (x_ref[...] * gate).astype(o_ref.dtype)


@functools.lru_cache(maxsize=None)
def _se_constants(c, l, dtype_name, fold_inv_len):
    """0/1 pooling (C*L, C) and replication (C, C*L) matrices, built once."""
    eye = np.eye(c, dtype=np.float64)
    scale = (1.0 / l) if fold_inv_len else 1.0
    pool = jnp.asarray(np.repeat(eye * scale, l, axis=0), dtype=dtype_name)      # (C*L, C)
    repl = jnp.asarray(np.repeat(eye, l, axis=1), dtype=dtype_name)              # (C, C*L)
    return pool, repl


def se_block(x, w1, w2, *, batch_block=1024, donate_x=False):
    """Squeeze-and-excitation.

    x:  (B, C, L) activations.
    w1: (h, C) first Linear weight (PyTorch (out, in) layout, no bias).
    w2: (C, h) second Linear weight (PyTorch (out, in) layout, no bias).
    Returns x * sigmoid(relu(mean_L(x) @ w1.T) @ w2.T)[:, :, None].
    """
    B, C, L = x.shape
    h = w1.shape[0]
    CL = C * L
    dtype = jnp.dtype(x.dtype)
    itemsize = dtype.itemsize

    # Lane-dense 2-D view (free row-major reshape in the wrapper).
    x2 = x.reshape(B, CL)

    # Constant pooling / replication matrices (hoisted + cached per (C, L, dtype)).
    fold_inv_len = (L & (L - 1)) == 0            # 1/L exact in any float dtype
    pool, repl = _se_constants(C, L, dtype.name, bool(fold_inv_len))

    # Tiny excitation weights: pre-transposed, f32; fold 1/L here if not in pool.
    w1t = w1.T.astype(jnp.float32)
    if not fold_inv_len:
        w1t = w1t * jnp.float32(1.0 / L)
    w2t = w2.T.astype(jnp.float32)

    # --- batch tile: aim for >= 2 grid steps (v7x megacore), cap by batch_block ---
    if B <= 8:
        bt = B
    else:
        bt = min(batch_block, _round_up(pl.cdiv(B, 2), 8))

    # --- generation-aware VMEM budget (includes gate slab and f32 temps) ---
    const_bytes = 2 * CL * C * itemsize + 2 * C * h * 4       # pool+repl, w1t+w2t
    try:
        vmem_cap = int(getattr(pltpu.get_tpu_info(), "vmem_capacity_bytes",
                               64 * 1024 * 1024))
    except Exception:
        vmem_cap = 64 * 1024 * 1024                            # v7x-safe fallback
    budget = vmem_cap * 3 // 4                                 # compiler headroom

    def vmem_needed(bt_):
        slab = bt_ * CL * itemsize          # one (bt, C*L) slab in x dtype
        gate = bt_ * CL * itemsize          # replication-matmul result (x dtype)
        f32_tmp = 3 * bt_ * C * 4           # pooled / hidden / pre-replication gate
        # in + out double-buffered, constants double-buffered, temps, slack.
        return 4 * slab + 2 * const_bytes + gate + f32_tmp + (2 << 20)

    while B > 8 and bt > 8 and vmem_needed(bt) > budget:
        bt = max(8, ((bt // 2) // 8) * 8)

    vmem_limit = int(min(vmem_cap, max(32 * 1024 * 1024, vmem_needed(bt))))

    grid = (pl.cdiv(B, bt),)

    cost = pl.CostEstimate(
        flops=(2 * B * CL * C                # pooling matmul
               + 2 * B * C * h + 2 * B * h * C   # excitation linears
               + 2 * B * C * CL              # gate replication matmul
               + B * CL),                    # final rescale
        transcendentals=B * C,               # sigmoid applied pre-replication
        bytes_accessed=2 * B * CL * itemsize + const_bytes,
    )

    out2 = pl.pallas_call(
        _se_kernel,
        out_shape=jax.ShapeDtypeStruct((B, CL), x.dtype),
        grid_spec=pltpu.PrefetchScalarGridSpec(
            num_scalar_prefetch=0,
            grid=grid,
            in_specs=[
                pl.BlockSpec((bt, CL), lambda b: (b, 0)),   # x slab (lane-dense)
                pl.BlockSpec((CL, C), lambda b: (0, 0)),    # pooling matrix (resident)
                pl.BlockSpec((C, h), lambda b: (0, 0)),     # W1^T (resident, f32)
                pl.BlockSpec((h, C), lambda b: (0, 0)),     # W2^T (resident, f32)
                pl.BlockSpec((C, CL), lambda b: (0, 0)),    # replication matrix (resident)
            ],
            out_specs=pl.BlockSpec((bt, CL), lambda b: (b, 0)),
        ),
        compiler_params=pltpu.CompilerParams(
            dimension_semantics=("parallel",),
            vmem_limit_bytes=vmem_limit,
        ),
        cost_estimate=cost,
        input_output_aliases=({0: 0} if donate_x else {}),
    )(x2, pool, w1t, w2t, repl)

    return out2.reshape(B, C, L)


def se_block_reference(x, w1, w2):
    """Pure-JAX reference mirroring the PyTorch forward."""
    y = jnp.mean(x, axis=-1)                       # (B, C)
    y = jnp.maximum(y @ w1.T, 0.0)                 # (B, h)
    y = jax.nn.sigmoid(y @ w2.T)                   # (B, C)
    return x * y[:, :, None]


if __name__ == "__main__":
    # Module config: c=64, r=16 -> hidden h = c // r = 4 (>= 4, so se_ch_low unused)
    B, C, L = 2, 64, 16
    r = 16
    h = C // r
    if h < 4:
        h = 4

    key = jax.random.PRNGKey(0)
    kx, k1, k2 = jax.random.split(key, 3)
    x = jax.random.normal(kx, (B, C, L), dtype=jnp.float32)
    # PyTorch nn.Linear weight shapes: (out, in), no bias.
    w1 = jax.random.normal(k1, (h, C), dtype=jnp.float32) * 0.1
    w2 = jax.random.normal(k2, (C, h), dtype=jnp.float32) * 0.1

    out = jax.block_until_ready(se_block(x, w1, w2))

    ref = se_block_reference(x, w1, w2)
    assert out.shape == (B, C, L)
    assert jnp.allclose(out, ref, atol=1e-5, rtol=1e-5), "mismatch vs reference"
    print("KERNEL_OK")
</pallas_src>

<mosaic_0001>
module attributes {stable_mosaic.version = 11 : i64} {
  func.func @_se_kernel(%arg0: i32, %arg1: memref<2x1024xf32, #tpu.memory_space<vmem>>, %arg2: memref<1024x64xf32, #tpu.memory_space<vmem>>, %arg3: memref<64x4xf32, #tpu.memory_space<vmem>>, %arg4: memref<4x64xf32, #tpu.memory_space<vmem>>, %arg5: memref<64x1024xf32, #tpu.memory_space<vmem>>, %arg6: memref<2x1024xf32, #tpu.memory_space<vmem>>) attributes {dimension_semantics = [#tpu.dimension_semantics<parallel>], iteration_bounds = array<i64: 1>, scalar_prefetch = 0 : i64, scratch_operands = 0 : i64, tpu.core_type = #tpu.core_type<tc>, window_params = [{transform_indices = @transform_0, window_bounds = array<i64: 2, 1024>}, {pipeline_mode = #tpu.pipeline_mode<synchronous>, transform_indices = @transform_1, window_bounds = array<i64: 1024, 64>}, {pipeline_mode = #tpu.pipeline_mode<synchronous>, transform_indices = @transform_2, window_bounds = array<i64: 64, 4>}, {pipeline_mode = #tpu.pipeline_mode<synchronous>, transform_indices = @transform_3, window_bounds = array<i64: 4, 64>}, {pipeline_mode = #tpu.pipeline_mode<synchronous>, transform_indices = @transform_4, window_bounds = array<i64: 64, 1024>}, {transform_indices = @transform_5, window_bounds = array<i64: 2, 1024>}]} {
    %c0 = arith.constant 0 : index
    %c0_0 = arith.constant 0 : index
    %0 = vector.load %arg1[%c0, %c0_0] : memref<2x1024xf32, #tpu.memory_space<vmem>>, vector<2x1024xf32>
    %c0_1 = arith.constant 0 : index
    %c0_2 = arith.constant 0 : index
    %1 = vector.load %arg2[%c0_1, %c0_2] : memref<1024x64xf32, #tpu.memory_space<vmem>>, vector<1024x64xf32>
    %cst = arith.constant dense<0.000000e+00> : vector<2x64xf32>
    %2 = tpu.matmul %0, %1, %cst {dimension_numbers = #tpu.dot_dimension_numbers<[1], [0], [0], [1], [0, 0, 1, 1], [], []>} : vector<2x1024xf32>, vector<1024x64xf32>, vector<2x64xf32> -> vector<2x64xf32>
    %c0_3 = arith.constant 0 : index
    %c0_4 = arith.constant 0 : index
    %3 = vector.load %arg3[%c0_3, %c0_4] : memref<64x4xf32, #tpu.memory_space<vmem>>, vector<64x4xf32>
    %cst_5 = arith.constant dense<0.000000e+00> : vector<2x4xf32>
    %4 = tpu.matmul %2, %3, %cst_5 {dimension_numbers = #tpu.dot_dimension_numbers<[1], [0], [0], [1], [0, 0, 1, 1], [], []>} : vector<2x64xf32>, vector<64x4xf32>, vector<2x4xf32> -> vector<2x4xf32>
    %cst_6 = arith.constant 0.000000e+00 : f32
    %5 = vector.broadcast %cst_6 : f32 to vector<2x4xf32>
    %6 = arith.maximumf %4, %5 : vector<2x4xf32>
    %c0_7 = arith.constant 0 : index
    %c0_8 = arith.constant 0 : index
    %7 = vector.load %arg4[%c0_7, %c0_8] : memref<4x64xf32, #tpu.memory_space<vmem>>, vector<4x64xf32>
    %cst_9 = arith.constant dense<0.000000e+00> : vector<2x64xf32>
    %8 = tpu.matmul %6, %7, %cst_9 {dimension_numbers = #tpu.dot_dimension_numbers<[1], [0], [0], [1], [0, 0, 1, 1], [], []>} : vector<2x4xf32>, vector<4x64xf32>, vector<2x64xf32> -> vector<2x64xf32>
    %9 = arith.negf %8 : vector<2x64xf32>
    %10 = math.exp %9 : vector<2x64xf32>
    %cst_10 = arith.constant 1.000000e+00 : f32
    %11 = vector.broadcast %cst_10 : f32 to vector<2x64xf32>
    %12 = arith.addf %11, %10 : vector<2x64xf32>
    %13 = arith.divf %11, %12 : vector<2x64xf32>
    %c0_11 = arith.constant 0 : index
    %c0_12 = arith.constant 0 : index
    %14 = vector.load %arg5[%c0_11, %c0_12] : memref<64x1024xf32, #tpu.memory_space<vmem>>, vector<64x1024xf32>
    %cst_13 = arith.constant dense<0.000000e+00> : vector<2x1024xf32>
    %15 = tpu.matmul %13, %14, %cst_13 {dimension_numbers = #tpu.dot_dimension_numbers<[1], [0], [0], [1], [0, 0, 1, 1], [], []>} : vector<2x64xf32>, vector<64x1024xf32>, vector<2x1024xf32> -> vector<2x1024xf32>
    %c0_14 = arith.constant 0 : index
    %c0_15 = arith.constant 0 : index
    %16 = vector.load %arg1[%c0_14, %c0_15] : memref<2x1024xf32, #tpu.memory_space<vmem>>, vector<2x1024xf32>
    %17 = arith.mulf %16, %15 : vector<2x1024xf32>
    %c0_16 = arith.constant 0 : index
    %c0_17 = arith.constant 0 : index
    %18 = vector.load %arg6[%c0_16, %c0_17] : memref<2x1024xf32, #tpu.memory_space<vmem>>, vector<2x1024xf32>
    tpu.vector_store %arg6[%c0_16, %c0_17], %17 {strides = array<i32>} : memref<2x1024xf32, #tpu.memory_space<vmem>>, vector<2x1024xf32>,
    return
  }
  func.func @transform_0(%arg0: i32) -> (i32, i32) {
    %c0_i32 = arith.constant 0 : i32
    %c0_i32_0 = arith.constant 0 : i32
    return %arg0, %c0_i32 : i32, i32
  }
  func.func @transform_1(%arg0: i32) -> (i32, i32) {
    %c0_i32 = arith.constant 0 : i32
    %c0_i32_0 = arith.constant 0 : i32
    %c0_i32_1 = arith.constant 0 : i32
    return %c0_i32, %c0_i32_0 : i32, i32
  }
  func.func @transform_2(%arg0: i32) -> (i32, i32) {
    %c0_i32 = arith.constant 0 : i32
    %c0_i32_0 = arith.constant 0 : i32
    %c0_i32_1 = arith.constant 0 : i32
    return %c0_i32, %c0_i32_0 : i32, i32
  }
  func.func @transform_3(%arg0: i32) -> (i32, i32) {
    %c0_i32 = arith.constant 0 : i32
    %c0_i32_0 = arith.constant 0 : i32
    %c0_i32_1 = arith.constant 0 : i32
    return %c0_i32, %c0_i32_0 : i32, i32
  }
  func.func @transform_4(%arg0: i32) -> (i32, i32) {
    %c0_i32 = arith.constant 0 : i32
    %c0_i32_0 = arith.constant 0 : i32
    %c0_i32_1 = arith.constant 0 : i32
    return %c0_i32, %c0_i32_0 : i32, i32
  }
  func.func @transform_5(%arg0: i32) -> (i32, i32) {
    %c0_i32 = arith.constant 0 : i32
    %c0_i32_0 = arith.constant 0 : i32
    return %arg0, %c0_i32 : i32, i32
  }
}

</mosaic_0001>

<bundles_post_ra>
// kernel: tpu_custom_call.1
= control target key start
LH: loop header
LB: loop body
LE: loop exit
PB: predicated region body
PF: predicated region fallthrough
CT: control target
= control target key end

     0   :  { %v1478_v47 = vmov 1983009808   ;;  %v157_v49 = vlaneseq  ;;  %s2173_s0 = inlined_call_operand.vmem [shape: f32[2,1024], index: 0, kind: input, shape index: {}]   ;;  %s2174_s1 = inlined_call_operand.vmem [shape: f32[1024,64], index: 1, kind: input, shape index: {}]   ;;  %s2175_s2 = inlined_call_operand.vmem [shape: f32[64,4], index: 2, kind: input, shape index: {}]   ;;  %s2176_s3 = inlined_call_operand.vmem [shape: f32[4,64], index: 3, kind: input, shape index: {}]   ;;  %s2177_s4 = inlined_call_operand.vmem [shape: f32[64,1024], index: 4, kind: input, shape index: {}]   ;;  %s2178_s5 = inlined_call_operand.hbm [shape: f32[2,1024], index: 5, kind: output, shape index: {}]  }
   0x1   :  { %v39_v0 = vld [vmem:[%s2174_s1 + $0x80] sm:$0xff]  ;;  %v40_v1 = vld [vmem:[%s2174_s1 + $0x88] sm:$0xff]  ;;  %v41_v11 = vld [vmem:[%s2174_s1 + $0x90] sm:$0xff]  ;;  %v155_v48 = vunpack.c.l.s4 %v1478_v47 }
   0x2   :  { %v71_v2 = vld [vmem:[%s2174_s1 + $0x180] sm:$0xff]  ;;  %v1239_v3 = vpack.c.bf16 %v40_v1, %v39_v0  ;;  %v72_v4 = vld [vmem:[%s2174_s1 + $0x188] sm:$0xff]  ;;  %v42_v13 = vld [vmem:[%s2174_s1 + $0x98] sm:$0xff]  ;;  %v158_v0 = vshrl.u32 %v157_v49, 7 }
   0x3   :  { %v23_v5 = vld [vmem:[%s2174_s1] sm:$0xff]  ;;  %v24_v6 = vld [vmem:[%s2174_s1 + $0x8] sm:$0xff]  ;;  %v1271_v7 = vpack.c.bf16 %v72_v4, %v71_v2  ;;  %v73_v14 = vld [vmem:[%s2174_s1 + $0x190] sm:$0xff]  ;;  %v1243_v16 = vpack.c.bf16 %v42_v13, %v41_v11  ;;  %v156_v63 = vunpack.c.0.s8 %v155_v48 }
   0x4   :  { %v1241_v8 = vpack.c.bf16 %v24_v6, %v23_v5  ;;  %v55_v9 = vld [vmem:[%s2174_s1 + $0x100] sm:$0xff]  ;;  %v56_v10 = vld [vmem:[%s2174_s1 + $0x108] sm:$0xff]  ;;  %1240 = vmatprep.subr.bf16.mxu0 %v1239_v3  ;;  %v74_v15 = vld [vmem:[%s2174_s1 + $0x198] sm:$0xff] }
   0x5   :  { %v1273_v12 = vpack.c.bf16 %v56_v10, %v55_v9  ;;  %1272 = vmatprep.subr.bf16.mxu1 %v1271_v7  ;;  %v1275_v17 = vpack.c.bf16 %v74_v15, %v73_v14  ;;  %v25_v18 = vld [vmem:[%s2174_s1 + $0x10] sm:$0xff]  ;;  %v26_v19 = vld [vmem:[%s2174_s1 + $0x18] sm:$0xff]  ;;  %v43_v23 = vld [vmem:[%s2174_s1 + $0xa0] sm:$0xff]  ;;  %v1663_v13 = vsub.s32 %v156_v63, %v158_v0 }
   0x6   :  { %1242 = vmatpush3.bf16.msra.mxu0 %v1241_v8  ;;  %v57_v20 = vld [vmem:[%s2174_s1 + $0x110] sm:$0xff]  ;;  %v1245_v21 = vpack.c.bf16 %v26_v19, %v25_v18  ;;  %v58_v22 = vld [vmem:[%s2174_s1 + $0x118] sm:$0xff]  ;;  %v44_v24 = vld [vmem:[%s2174_s1 + $0xa8] sm:$0xff] }
   0x7   :  { %1274 = vmatpush3.bf16.msra.mxu1 %v1273_v12  ;;  %1244 = vmatprep.subr.bf16.mxu0 %v1243_v16  ;;  %v1277_v25 = vpack.c.bf16 %v58_v22, %v57_v20  ;;  %v1247_v26 = vpack.c.bf16 %v44_v24, %v43_v23  ;;  %v75_v27 = vld [vmem:[%s2174_s1 + $0x1a0] sm:$0xff]  ;;  %v76_v28 = vld [vmem:[%s2174_s1 + $0x1a8] sm:$0xff]  ;;  %v45_v35 = vld [vmem:[%s2174_s1 + $0xb0] sm:$0xff] }
   0x8   :  { %1276 = vmatprep.subr.bf16.mxu1 %v1275_v17  ;;  %v27_v29 = vld [vmem:[%s2174_s1 + $0x20] sm:$0xff]  ;;  %v1279_v30 = vpack.c.bf16 %v76_v28, %v75_v27  ;;  %v28_v31 = vld [vmem:[%s2174_s1 + $0x28] sm:$0xff]  ;;  %v46_v36 = vld [vmem:[%s2174_s1 + $0xb8] sm:$0xff] }
   0x9   :  { %v59_v32 = vld [vmem:[%s2174_s1 + $0x120] sm:$0xff]  ;;  %v60_v33 = vld [vmem:[%s2174_s1 + $0x128] sm:$0xff]  ;;  %v1249_v34 = vpack.c.bf16 %v28_v31, %v27_v29  ;;  %v77_v37 = vld [vmem:[%s2174_s1 + $0x1b0] sm:$0xff]  ;;  %v1251_v39 = vpack.c.bf16 %v46_v36, %v45_v35 }
   0xa   :  { %1246 = vmatpush3.bf16.msra.mxu0 %v1245_v21  ;;  %v1281_v38 = vpack.c.bf16 %v60_v33, %v59_v32  ;;  %v78_v40 = vld [vmem:[%s2174_s1 + $0x1b8] sm:$0xff]  ;;  %v29_v41 = vld [vmem:[%s2174_s1 + $0x30] sm:$0xff]  ;;  %v47_v46 = vld [vmem:[%s2174_s1 + $0xc0] sm:$0xff] }
   0xb   :  { %1278 = vmatpush3.bf16.msra.mxu1 %v1277_v25  ;;  %1248 = vmatprep.subr.bf16.mxu0 %v1247_v26  ;;  %v30_v42 = vld [vmem:[%s2174_s1 + $0x38] sm:$0xff]  ;;  %v1283_v43 = vpack.c.bf16 %v78_v40, %v77_v37  ;;  %v61_v44 = vld [vmem:[%s2174_s1 + $0x130] sm:$0xff]  ;;  %v48_v50 = vld [vmem:[%s2174_s1 + $0xc8] sm:$0xff] }
   0xc   :  { %1280 = vmatprep.subr.bf16.mxu1 %v1279_v30  ;;  %v62_v45 = vld [vmem:[%s2174_s1 + $0x138] sm:$0xff]  ;;  %v79_v51 = vld [vmem:[%s2174_s1 + $0x1c0] sm:$0xff]  ;;  %v80_v52 = vld [vmem:[%s2174_s1 + $0x1c8] sm:$0xff]  ;;  %v1253_v53 = vpack.c.bf16 %v30_v42, %v29_v41  ;;  %v1255_v55 = vpack.c.bf16 %v48_v50, %v47_v46 }
   0xd   :  { %v1285_v54 = vpack.c.bf16 %v62_v45, %v61_v44  ;;  %v31_v56 = vld [vmem:[%s2174_s1 + $0x40] sm:$0xff]  ;;  %v32_v57 = vld [vmem:[%s2174_s1 + $0x48] sm:$0xff]  ;;  %v1287_v59 = vpack.c.bf16 %v80_v52, %v79_v51  ;;  %v49_v61 = vld [vmem:[%s2174_s1 + $0xd0] sm:$0xff] }
   0xe   :  { %1250 = vmatpush3.bf16.msra.mxu0 %v1249_v34  ;;  %v63_v58 = vld [vmem:[%s2174_s1 + $0x140] sm:$0xff]  ;;  %v64_v60 = vld [vmem:[%s2174_s1 + $0x148] sm:$0xff]  ;;  %v50_v62 = vld [vmem:[%s2174_s1 + $0xd8] sm:$0xff]  ;;  %v1257_v3 = vpack.c.bf16 %v32_v57, %v31_v56 }
   0xf   :  { %1282 = vmatpush3.bf16.msra.mxu1 %v1281_v38  ;;  %1252 = vmatprep.subr.bf16.mxu0 %v1251_v39  ;;  %v81_v1 = vld [vmem:[%s2174_s1 + $0x1d0] sm:$0xff]  ;;  %v82_v2 = vld [vmem:[%s2174_s1 + $0x1d8] sm:$0xff]  ;;  %v1289_v4 = vpack.c.bf16 %v64_v60, %v63_v58  ;;  %v1259_v5 = vpack.c.bf16 %v50_v62, %v49_v61  ;;  %v51_v11 = vld [vmem:[%s2174_s1 + $0xe0] sm:$0xff] }
  0x10   :  { %1284 = vmatprep.subr.bf16.mxu1 %v1283_v43  ;;  %v33_v6 = vld [vmem:[%s2174_s1 + $0x50] sm:$0xff]  ;;  %v34_v7 = vld [vmem:[%s2174_s1 + $0x58] sm:$0xff]  ;;  %v1291_v9 = vpack.c.bf16 %v82_v2, %v81_v1  ;;  %v52_v12 = vld [vmem:[%s2174_s1 + $0xe8] sm:$0xff] }
  0x11   :  { %v65_v8 = vld [vmem:[%s2174_s1 + $0x150] sm:$0xff]  ;;  %v66_v10 = vld [vmem:[%s2174_s1 + $0x158] sm:$0xff]  ;;  %v83_v14 = vld [vmem:[%s2174_s1 + $0x1e0] sm:$0xff]  ;;  %v1261_v16 = vpack.c.bf16 %v34_v7, %v33_v6  ;;  %v1263_v19 = vpack.c.bf16 %v52_v12, %v51_v11 }
  0x12   :  { %1254 = vmatpush3.bf16.msra.mxu0 %v1253_v53  ;;  %v84_v15 = vld [vmem:[%s2174_s1 + $0x1e8] sm:$0xff]  ;;  %v35_v17 = vld [vmem:[%s2174_s1 + $0x60] sm:$0xff]  ;;  %v1293_v18 = vpack.c.bf16 %v66_v10, %v65_v8  ;;  %v53_v25 = vld [vmem:[%s2174_s1 + $0xf0] sm:$0xff] }
  0x13   :  { %1286 = vmatpush3.bf16.msra.mxu1 %v1285_v54  ;;  %1256 = vmatprep.subr.bf16.mxu0 %v1255_v55  ;;  %v36_v20 = vld [vmem:[%s2174_s1 + $0x68] sm:$0xff]  ;;  %v67_v21 = vld [vmem:[%s2174_s1 + $0x160] sm:$0xff]  ;;  %v1295_v23 = vpack.c.bf16 %v84_v15, %v83_v14  ;;  %v54_v26 = vld [vmem:[%s2174_s1 + $0xf8] sm:$0xff] }
  0x14   :  { %1288 = vmatprep.subr.bf16.mxu1 %v1287_v59  ;;  %v1683_v22 = vld [vmem:[%s2173_s0] sm:$0xff]  ;;  %v68_v24 = vld [vmem:[%s2174_s1 + $0x168] sm:$0xff]  ;;  %v85_v29 = vld [vmem:[%s2174_s1 + $0x1f0] sm:$0xff]  ;;  %v1265_v31 = vpack.c.bf16 %v36_v20, %v35_v17  ;;  %v1267_v35 = vpack.c.bf16 %v54_v26, %v53_v25 }
  0x15   :  { %v160_v27 = vrot.slane %v1683_v22, %v1663_v13  ;;  %v153_v28 = vcombine.high %v1683_v22, %v1683_v22  ;;  %v86_v30 = vld [vmem:[%s2174_s1 + $0x1f8] sm:$0xff]  ;;  %v1297_v34 = vpack.c.bf16 %v68_v24, %v67_v21  ;;  %v37_v36 = vld [vmem:[%s2174_s1 + $0x70] sm:$0xff]  ;;  %v103_v42 = vld [vmem:[%s2174_s1 + $0x280] sm:$0xff] }
  0x16   :  { %1258 = vmatpush3.bf16.msra.mxu0 %v1257_v3  ;;  %v38_v37 = vld [vmem:[%s2174_s1 + $0x78] sm:$0xff]  ;;  %v69_v38 = vld [vmem:[%s2174_s1 + $0x170] sm:$0xff]  ;;  %v1299_v39 = vpack.c.bf16 %v86_v30, %v85_v29  ;;  %v104_v43 = vld [vmem:[%s2174_s1 + $0x288] sm:$0xff] }
  0x17   :  { %1290 = vmatpush3.bf16.msra.mxu1 %v1289_v4  ;;  %1260 = vmatprep.subr.bf16.mxu0 %v1259_v5  ;;  %v168_v32 = vcombine.high %v160_v27, %v160_v27  ;;  %v167_v33 = vrot.slane %v153_v28, %v1663_v13  ;;  %v70_v40 = vld [vmem:[%s2174_s1 + $0x178] sm:$0xff]  ;;  %v135_v44 = vld [vmem:[%s2174_s1 + $0x380] sm:$0xff]  ;;  %v136_v45 = vld [vmem:[%s2174_s1 + $0x388] sm:$0xff]  ;;  %v1269_v46 = vpack.c.bf16 %v38_v37, %v37_v36 }
  0x18   :  { %1292 = vmatprep.subr.bf16.mxu1 %v1291_v9  ;;  %v1301_v47 = vpack.c.bf16 %v70_v40, %v69_v38  ;;  %v1303_v48 = vpack.c.bf16 %v104_v43, %v103_v42  ;;  %v87_v49 = vld [vmem:[%s2174_s1 + $0x200] sm:$0xff]  ;;  %v88_v50 = vld [vmem:[%s2174_s1 + $0x208] sm:$0xff]  ;;  %v1335_v52 = vpack.c.bf16 %v136_v45, %v135_v44  ;;  %v105_v54 = vld [vmem:[%s2174_s1 + $0x290] sm:$0xff] }
  0x19   :  { %259 = vmatprep.mubr.f32.mxu0 %v168_v32  ;;  %v169_v41 = vcombine.high %v167_v33, %v167_v33  ;;  %v119_v51 = vld [vmem:[%s2174_s1 + $0x300] sm:$0xff]  ;;  %v120_v53 = vld [vmem:[%s2174_s1 + $0x308] sm:$0xff]  ;;  %v106_v55 = vld [vmem:[%s2174_s1 + $0x298] sm:$0xff]  ;;  %v1305_v58 = vpack.c.bf16 %v88_v50, %v87_v49 }
  0x1a   :  { %1262 = vmatpush3.bf16.msra.mxu0 %v1261_v16  ;;  %v137_v56 = vld [vmem:[%s2174_s1 + $0x390] sm:$0xff]  ;;  %v138_v57 = vld [vmem:[%s2174_s1 + $0x398] sm:$0xff]  ;;  %v1337_v59 = vpack.c.bf16 %v120_v53, %v119_v51  ;;  %v1307_v60 = vpack.c.bf16 %v106_v55, %v105_v54  ;;  %v107_v2 = vld [vmem:[%s2174_s1 + $0x2a0] sm:$0xff] }
  0x1b   :  { %1294 = vmatpush3.bf16.msra.mxu1 %v1293_v18  ;;  %1264 = vmatprep.subr.bf16.mxu0 %v1263_v19  ;;  %v89_v61 = vld [vmem:[%s2174_s1 + $0x210] sm:$0xff]  ;;  %v90_v62 = vld [vmem:[%s2174_s1 + $0x218] sm:$0xff]  ;;  %v1339_v0 = vpack.c.bf16 %v138_v57, %v137_v56  ;;  %v108_v3 = vld [vmem:[%s2174_s1 + $0x2a8] sm:$0xff] }
  0x1c   :  { %1296 = vmatprep.subr.bf16.mxu1 %v1295_v23  ;;  %329 = vmatprep.mubr.f32.mxu1 %v169_v41  ;;  %v121_v63 = vld [vmem:[%s2174_s1 + $0x310] sm:$0xff]  ;;  %v122_v1 = vld [vmem:[%s2174_s1 + $0x318] sm:$0xff]  ;;  %v139_v4 = vld [vmem:[%s2174_s1 + $0x3a0] sm:$0xff]  ;;  %v1309_v6 = vpack.c.bf16 %v90_v62, %v89_v61  ;;  %v1311_v8 = vpack.c.bf16 %v108_v3, %v107_v2 }
  0x1d   :  { %v140_v5 = vld [vmem:[%s2174_s1 + $0x3a8] sm:$0xff]  ;;  %v1341_v7 = vpack.c.bf16 %v122_v1, %v121_v63  ;;  %v91_v9 = vld [vmem:[%s2174_s1 + $0x220] sm:$0xff]  ;;  %v109_v15 = vld [vmem:[%s2174_s1 + $0x2b0] sm:$0xff] }
  0x1e   :  { %1266 = vmatpush3.bf16.msra.mxu0 %v1265_v31  ;;  %v92_v10 = vld [vmem:[%s2174_s1 + $0x228] sm:$0xff]  ;;  %v123_v11 = vld [vmem:[%s2174_s1 + $0x320] sm:$0xff]  ;;  %v1343_v12 = vpack.c.bf16 %v140_v5, %v139_v4  ;;  %v110_v16 = vld [vmem:[%s2174_s1 + $0x2b8] sm:$0xff] }
  0x1f   :  { %1298 = vmatpush3.bf16.msra.mxu1 %v1297_v34  ;;  %1268 = vmatprep.subr.bf16.mxu0 %v1267_v35  ;;  %v124_v14 = vld [vmem:[%s2174_s1 + $0x328] sm:$0xff]  ;;  %v141_v17 = vld [vmem:[%s2174_s1 + $0x3b0] sm:$0xff]  ;;  %v142_v18 = vld [vmem:[%s2174_s1 + $0x3b8] sm:$0xff]  ;;  %v1313_v19 = vpack.c.bf16 %v92_v10, %v91_v9  ;;  %v1315_v23 = vpack.c.bf16 %v110_v16, %v109_v15 }
  0x20   :  { %1300 = vmatprep.subr.bf16.mxu1 %v1299_v39  ;;  %v93_v20 = vld [vmem:[%s2174_s1 + $0x230] sm:$0xff]  ;;  %v1345_v21 = vpack.c.bf16 %v124_v14, %v123_v11  ;;  %v94_v24 = vld [vmem:[%s2174_s1 + $0x238] sm:$0xff]  ;;  %v111_v28 = vld [vmem:[%s2174_s1 + $0x2c0] sm:$0xff] }
  0x21   :  { %v125_v25 = vld [vmem:[%s2174_s1 + $0x330] sm:$0xff]  ;;  %v126_v26 = vld [vmem:[%s2174_s1 + $0x338] sm:$0xff]  ;;  %v112_v29 = vld [vmem:[%s2174_s1 + $0x2c8] sm:$0xff] }
  0x22   :  { %1270 = vmatpush3.bf16.msra.mxu0 %v1269_v46  ;;  %v143_v30 = vld [vmem:[%s2174_s1 + $0x3c0] sm:$0xff]  ;;  %v144_v31 = vld [vmem:[%s2174_s1 + $0x3c8] sm:$0xff] }
  0x23   :  { %1302 = vmatpush3.bf16.msra.mxu1 %v1301_v47  ;;  %1304 = vmatprep.subr.bf16.mxu0 %v1303_v48  ;;  %v1828_v32 = vld [vmem:[%s2173_s0 + $0x8] sm:$0xff] }
  0x24   :  { %1336 = vmatprep.subr.bf16.mxu1 %v1335_v52 }
  0x25   :  { %260 = vmatmul.mubr.f32.vlgmr.msra.gmra.mrb[0].mxu0 %v160_v27  ;;  %v1347_v27 = vpack.c.bf16 %v142_v18, %v141_v17 }
  0x26   :  { %330 = vmatmul.mubr.f32.vlgmr.msra.gmra.mrb[0].mxu1 %v167_v33  ;;  %1306 = vmatpush3.bf16.msra.mxu0 %v1305_v58 }
  0x27   :  { %1338 = vmatpush3.bf16.msra.mxu1 %v1337_v59  ;;  %1308 = vmatprep.subr.bf16.mxu0 %v1307_v60 }
  0x28   :  { %1340 = vmatprep.subr.bf16.mxu1 %v1339_v0 }
  0x2a   :  { %1310 = vmatpush3.bf16.msra.mxu0 %v1309_v6 }
  0x2b   :  { %1342 = vmatpush3.bf16.msra.mxu1 %v1341_v7  ;;  %1312 = vmatprep.subr.bf16.mxu0 %v1311_v8 }
  0x2c   :  { %1344 = vmatprep.subr.bf16.mxu1 %v1343_v12 }
  0x2d   :  { %10 = vsyncpa [#allocation3], 0  ;;  %v1317_v33 = vpack.c.bf16 %v94_v24, %v93_v20  ;;  %v1832_v34 = vrot.slane %v1828_v32, %v1663_v13  ;;  %v170_v35 = vcombine.high %v1828_v32, %v1828_v32  ;;  %v1349_v36 = vpack.c.bf16 %v126_v26, %v125_v25  ;;  %v95_v38 = vld [vmem:[%s2174_s1 + $0x240] sm:$0xff]  ;;  %v96_v39 = vld [vmem:[%s2174_s1 + $0x248] sm:$0xff] }
  0x2e   :  { %1314 = vmatpush3.bf16.msra.mxu0 %v1313_v19  ;;  %v1319_v37 = vpack.c.bf16 %v112_v29, %v111_v28  ;;  %v127_v40 = vld [vmem:[%s2174_s1 + $0x340] sm:$0xff]  ;;  %v1351_v41 = vpack.c.bf16 %v144_v31, %v143_v30  ;;  %v128_v42 = vld [vmem:[%s2174_s1 + $0x348] sm:$0xff]  ;;  %v113_v43 = vld [vmem:[%s2174_s1 + $0x2d0] sm:$0xff]  ;;  %v1321_v49 = vpack.c.bf16 %v96_v39, %v95_v38  ;;  %v1479_v25 = vmov 0.0|0.0  }
  0x2f   :  { %1346 = vmatpush3.bf16.msra.mxu1 %v1345_v21  ;;  %1316 = vmatprep.subr.bf16.mxu0 %v1315_v23  ;;  %v114_v44 = vld [vmem:[%s2174_s1 + $0x2d8] sm:$0xff]  ;;  %v185_v45 = vcombine.high %v1832_v34, %v1832_v34  ;;  %v184_v46 = vrot.slane %v170_v35, %v1663_v13  ;;  %v145_v47 = vld [vmem:[%s2174_s1 + $0x3d0] sm:$0xff]  ;;  %v1353_v51 = vpack.c.bf16 %v128_v42, %v127_v40  ;;  %v115_v58 = vld [vmem:[%s2174_s1 + $0x2e0] sm:$0xff]  ;;  %vm1480_vm0 = vmmov 0  }
  0x30   :  { %1348 = vmatprep.subr.bf16.mxu1 %v1347_v27  ;;  %v146_v48 = vld [vmem:[%s2174_s1 + $0x3d8] sm:$0xff]  ;;  %v1323_v52 = vpack.c.bf16 %v114_v44, %v113_v43  ;;  %v97_v53 = vld [vmem:[%s2174_s1 + $0x250] sm:$0xff]  ;;  %v116_v59 = vld [vmem:[%s2174_s1 + $0x2e8] sm:$0xff]  ;;  %vm563_vm1 = vcmask 1043456   ;;  %vm483_vm2 = vcmask 523264   ;;  %vm559_vm3 = vcmask 31744  }
  0x31   :  { %399 = vmatprep.mubr.f32.mxu0 %v185_v45  ;;  %v186_v50 = vcombine.high %v184_v46, %v184_v46  ;;  %v98_v54 = vld [vmem:[%s2174_s1 + $0x258] sm:$0xff]  ;;  %v129_v55 = vld [vmem:[%s2174_s1 + $0x350] sm:$0xff]  ;;  %v1355_v56 = vpack.c.bf16 %v146_v48, %v145_v47  ;;  %v147_v60 = vld [vmem:[%s2174_s1 + $0x3e0] sm:$0xff]  ;;  %v1327_v0 = vpack.c.bf16 %v116_v59, %v115_v58 }
  0x32   :  { %1318 = vmatpush3.bf16.msra.mxu0 %v1317_v33  ;;  %v130_v57 = vld [vmem:[%s2174_s1 + $0x358] sm:$0xff]  ;;  %v148_v61 = vld [vmem:[%s2174_s1 + $0x3e8] sm:$0xff]  ;;  %v1325_v62 = vpack.c.bf16 %v98_v54, %v97_v53  ;;  %v99_v1 = vld [vmem:[%s2174_s1 + $0x260] sm:$0xff] }
  0x33   :  { %1350 = vmatpush3.bf16.msra.mxu1 %v1349_v36  ;;  %1320 = vmatprep.subr.bf16.mxu0 %v1319_v37  ;;  %v1357_v63 = vpack.c.bf16 %v130_v57, %v129_v55  ;;  %v100_v2 = vld [vmem:[%s2174_s1 + $0x268] sm:$0xff]  ;;  %v131_v3 = vld [vmem:[%s2174_s1 + $0x360] sm:$0xff]  ;;  %v1359_v4 = vpack.c.bf16 %v148_v61, %v147_v60  ;;  %v117_v6 = vld [vmem:[%s2174_s1 + $0x2f0] sm:$0xff]  ;;  %v1481_v36 = vmov 0.0  }
  0x34   :  { %1352 = vmatprep.subr.bf16.mxu1 %v1351_v41  ;;  %469 = vmatprep.mubr.f32.mxu1 %v186_v50  ;;  %v132_v5 = vld [vmem:[%s2174_s1 + $0x368] sm:$0xff]  ;;  %v118_v7 = vld [vmem:[%s2174_s1 + $0x2f8] sm:$0xff]  ;;  %v149_v8 = vld [vmem:[%s2174_s1 + $0x3f0] sm:$0xff]  ;;  %v1329_v10 = vpack.c.bf16 %v100_v2, %v99_v1 }
  0x35   :  { %v150_v9 = vld [vmem:[%s2174_s1 + $0x3f8] sm:$0xff]  ;;  %v1361_v11 = vpack.c.bf16 %v132_v5, %v131_v3  ;;  %v1331_v12 = vpack.c.bf16 %v118_v7, %v117_v6  ;;  %v101_v14 = vld [vmem:[%s2174_s1 + $0x270] sm:$0xff]  ;;  %v475_v21 = vld [vmem:[%s2175_s2] sm:$0xff] }
  0x36   :  { %1322 = vmatpush3.bf16.msra.mxu0 %v1321_v49  ;;  %v102_v15 = vld [vmem:[%s2174_s1 + $0x278] sm:$0xff]  ;;  %v1363_v16 = vpack.c.bf16 %v150_v9, %v149_v8  ;;  %v133_v17 = vld [vmem:[%s2174_s1 + $0x370] sm:$0xff]  ;;  %v476_v23 = vld [vmem:[%s2175_s2 + $0x8] sm:$0xff] }
  0x37   :  { %1354 = vmatpush3.bf16.msra.mxu1 %v1353_v51  ;;  %1324 = vmatprep.subr.bf16.mxu0 %v1323_v52  ;;  %v134_v18 = vld [vmem:[%s2174_s1 + $0x378] sm:$0xff]  ;;  %v1333_v19 = vpack.c.bf16 %v102_v15, %v101_v14  ;;  %v477_v24 = vld [vmem:[%s2175_s2 + $0x10] sm:$0xff]  ;;  %v1368_v26 = vpack.c.bf16 %v476_v23, %v475_v21  ;;  %v479_v29 = vld [vmem:[%s2175_s2 + $0x20] sm:$0xff] }
  0x38   :  { %1356 = vmatprep.subr.bf16.mxu1 %v1355_v56  ;;  %v1365_v20 = vpack.c.bf16 %v134_v18, %v133_v17  ;;  %v478_v27 = vld [vmem:[%s2175_s2 + $0x18] sm:$0xff]  ;;  %v480_v30 = vld [vmem:[%s2175_s2 + $0x28] sm:$0xff]  ;;  %v481_v33 = vld [vmem:[%s2175_s2 + $0x30] sm:$0xff] }
  0x39   :  { %v1371_v28 = vpack.c.bf16 %v478_v27, %v477_v24  ;;  %v1374_v31 = vpack.c.bf16 %v480_v30, %v479_v29  ;;  %v558_v37 = vld [vmem:[%s2176_s3] sm:$0xf]  ;;  %v644_v56 = vld [vmem:[%s2177_s4 + $0x8] sm:$0xff]  ;;  %v646_v58 = vld [vmem:[%s2177_s4 + $0x18] sm:$0xff] }
  0x3a   :  { %1326 = vmatpush3.bf16.msra.mxu0 %v1325_v62  ;;  %v652_v57 = vld [vmem:[%s2177_s4 + $0x48] sm:$0xff]  ;;  %v654_v60 = vld [vmem:[%s2177_s4 + $0x58] sm:$0xff]  ;;  %v643_v61 = vld [vmem:[%s2177_s4] sm:$0xff] }
  0x3b   :  { %1358 = vmatpush3.bf16.msra.mxu1 %v1357_v63  ;;  %1328 = vmatprep.subr.bf16.mxu0 %v1327_v0  ;;  %v1379_v59 = vpack.c.bf16 %v652_v57, %v644_v56  ;;  %v651_v62 = vld [vmem:[%s2177_s4 + $0x40] sm:$0xff]  ;;  %v1395_v63 = vpack.c.bf16 %v654_v60, %v646_v58  ;;  %v645_v1 = vld [vmem:[%s2177_s4 + $0x10] sm:$0xff]  ;;  %v668_v5 = vld [vmem:[%s2177_s4 + $0xc8] sm:$0xff] }
  0x3c   :  { %1360 = vmatprep.subr.bf16.mxu1 %v1359_v4  ;;  %v1381_v0 = vpack.c.bf16 %v651_v62, %v643_v61  ;;  %v653_v2 = vld [vmem:[%s2177_s4 + $0x50] sm:$0xff]  ;;  %v660_v4 = vld [vmem:[%s2177_s4 + $0x88] sm:$0xff]  ;;  %v662_v6 = vld [vmem:[%s2177_s4 + $0x98] sm:$0xff] }
  0x3d   :  { %v1397_v3 = vpack.c.bf16 %v653_v2, %v645_v1  ;;  %v1383_v7 = vpack.c.bf16 %v668_v5, %v660_v4  ;;  %v670_v8 = vld [vmem:[%s2177_s4 + $0xd8] sm:$0xff]  ;;  %v659_v9 = vld [vmem:[%s2177_s4 + $0x80] sm:$0xff]  ;;  %v661_v14 = vld [vmem:[%s2177_s4 + $0x90] sm:$0xff] }
  0x3e   :  { %1330 = vmatpush3.bf16.msra.mxu0 %v1329_v10  ;;  %v667_v10 = vld [vmem:[%s2177_s4 + $0xc0] sm:$0xff]  ;;  %v669_v15 = vld [vmem:[%s2177_s4 + $0xd0] sm:$0xff]  ;;  %v676_v17 = vld [vmem:[%s2177_s4 + $0x108] sm:$0xff] }
  0x3f   :  { %1362 = vmatpush3.bf16.msra.mxu1 %v1361_v11  ;;  %1332 = vmatprep.subr.bf16.mxu0 %v1331_v12  ;;  %v1399_v11 = vpack.c.bf16 %v670_v8, %v662_v6  ;;  %v1385_v12 = vpack.c.bf16 %v667_v10, %v659_v9  ;;  %v684_v18 = vld [vmem:[%s2177_s4 + $0x148] sm:$0xff]  ;;  %v686_v21 = vld [vmem:[%s2177_s4 + $0x158] sm:$0xff]  ;;  %v675_v23 = vld [vmem:[%s2177_s4 + $0x100] sm:$0xff] }
  0x40   :  { %1364 = vmatprep.subr.bf16.mxu1 %v1363_v16  ;;  %v1401_v16 = vpack.c.bf16 %v669_v15, %v661_v14  ;;  %v683_v24 = vld [vmem:[%s2177_s4 + $0x140] sm:$0xff]  ;;  %v677_v27 = vld [vmem:[%s2177_s4 + $0x110] sm:$0xff]  ;;  %v692_v29 = vld [vmem:[%s2177_s4 + $0x188] sm:$0xff] }
  0x41   :  { %v655_v56 = vld [vmem:[%s2177_s4 + $0x60] sm:$0xff]  ;;  %v649_v57 = vld [vmem:[%s2177_s4 + $0x30] sm:$0xff]  ;;  %v672_v60 = vld [vmem:[%s2177_s4 + $0xe8] sm:$0xff] }
  0x42   :  { %1334 = vmatpush3.bf16.msra.mxu0 %v1333_v19  ;;  %v678_v19 = vld [vmem:[%s2177_s4 + $0x118] sm:$0xff]  ;;  %v657_v58 = vld [vmem:[%s2177_s4 + $0x70] sm:$0xff]  ;;  %v663_v1 = vld [vmem:[%s2177_s4 + $0xa0] sm:$0xff] }
  0x43   :  { %1366 = vmatpush3.bf16.msra.mxu1 %v1365_v20  ;;  %1367 = vmatprep.subr.bf16.mxu0 %v1479_v25  ;;  %v1387_v20 = vpack.c.bf16 %v684_v18, %v676_v17  ;;  %v666_v61 = vld [vmem:[%s2177_s4 + $0xb8] sm:$0xff]  ;;  %v671_v2 = vld [vmem:[%s2177_s4 + $0xe0] sm:$0xff]  ;;  %v665_v5 = vld [vmem:[%s2177_s4 + $0xb0] sm:$0xff] }
  0x44   :  { %1234 = vmatprep.subr.mxu1 %v1481_v36  ;;  %v674_v62 = vld [vmem:[%s2177_s4 + $0xf8] sm:$0xff]  ;;  %v673_v6 = vld [vmem:[%s2177_s4 + $0xf0] sm:$0xff]  ;;  %v688_v9 = vld [vmem:[%s2177_s4 + $0x168] sm:$0xff] }
  0x45   :  { %400 = vmatmul.mubr.f32.vlgmr.msra.gmra.mrb[2].mxu0 %v1832_v34  ;;  %v482_v34 = vld [vmem:[%s2175_s2 + $0x38] sm:$0xff]  ;;  %v1431_v4 = vpack.c.bf16 %v674_v62, %v666_v61  ;;  %v1433_v14 = vpack.c.bf16 %v673_v6, %v665_v5  ;;  %v679_v15 = vld [vmem:[%s2177_s4 + $0x120] sm:$0xff] }
  0x46   :  { %470 = vmatmul.mubr.f32.vlgmr.msra.gmra.mrb[2].mxu1 %v184_v46  ;;  %1369 = vmatpush3.bf16.msra.mxu0 %v1368_v26  ;;  %v1377_v35 = vpack.c.bf16 %v482_v34, %v481_v33  ;;  %v1389_v26 = vpack.c.bf16 %v683_v24, %v675_v23  ;;  %v694_v33 = vld [vmem:[%s2177_s4 + $0x198] sm:$0xff]  ;;  %v704_v23 = vld [vmem:[%s2177_s4 + $0x1e8] sm:$0xff] }
  0x47   :  { %1370 = vmatprep.subr.bf16.mxu0 %v1479_v25  ;;  %1231 = vmatprep.mubr.msk.f32.mxu0 %vm1480_vm0, %v1481_v36  ;;  %v702_v34 = vld [vmem:[%s2177_s4 + $0x1d8] sm:$0xff] }
  0x48   :  { %1236 = vmatprep.mubr.msk.f32.mxu1 %vm1480_vm0, %v1481_v36  ;;  %1235 = vmatpush3.msk.msra.mxu1 %vm563_vm1, %v558_v37  ;;  %v1407_v37 = vpack.c.bf16 %v702_v34, %v694_v33  ;;  %v682_v10 = vld [vmem:[%s2177_s4 + $0x138] sm:$0xff]  ;;  %v705_v33 = vld [vmem:[%s2177_s4 + $0x1f0] sm:$0xff] }
  0x49   :  { %1380 = vmatprep.subr.bf16.mxu1 %v1379_v59  ;;  %v664_v59 = vld [vmem:[%s2177_s4 + $0xa8] sm:$0xff]  ;;  %v698_v24 = vld [vmem:[%s2177_s4 + $0x1b8] sm:$0xff] }
  0x4a   :  { %1372 = vmatpush3.bf16.msra.mxu0 %v1371_v28  ;;  %v685_v28 = vld [vmem:[%s2177_s4 + $0x150] sm:$0xff] }
  0x4b   :  { %1373 = vmatprep.subr.bf16.mxu0 %v1479_v25  ;;  %v1405_v30 = vpack.c.bf16 %v685_v28, %v677_v27  ;;  %v695_v28 = vld [vmem:[%s2177_s4 + $0x1a0] sm:$0xff] }
  0x4e   :  { %1375 = vmatpush3.bf16.msra.mxu0 %v1374_v31  ;;  %v700_v31 = vld [vmem:[%s2177_s4 + $0x1c8] sm:$0xff] }
  0x4f   :  { %1376 = vmatprep.subr.bf16.mxu0 %v1479_v25  ;;  %v1403_v25 = vpack.c.bf16 %v686_v21, %v678_v19  ;;  %v681_v19 = vld [vmem:[%s2177_s4 + $0x130] sm:$0xff]  ;;  %v696_v21 = vld [vmem:[%s2177_s4 + $0x1a8] sm:$0xff] }
  0x52   :  { %1378 = vmatpush3.bf16.msra.mxu0 %v1377_v35  ;;  %v1391_v35 = vpack.c.bf16 %v700_v31, %v692_v29  ;;  %v1423_v29 = vpack.c.bf16 %v704_v23, %v696_v21  ;;  %v703_v31 = vld [vmem:[%s2177_s4 + $0x1e0] sm:$0xff] }
  0x53   :  { %1396 = vmatprep.subr.bf16.mxu0 %v1395_v63  ;;  %v1425_v34 = vpack.c.bf16 %v703_v31, %v695_v28 }
  0xf8   :  { %v1096_v38 = vpop.f32.mrb[0].mxu0 }
  0xf9   :  { %v1131_v39 = vpop.f32.mrb[0].mxu1  ;;  %v1097_v40 = vpop.f32.mrb[1].mxu0 }
  0xfa   :  { %v1098_v41 = vadd.f32 %v1097_v40, %v1096_v38  ;;  %v1132_v42 = vpop.f32.mrb[1].mxu1  ;;  %v691_v38 = vld [vmem:[%s2177_s4 + $0x180] sm:$0xff]  ;;  %v693_v40 = vld [vmem:[%s2177_s4 + $0x190] sm:$0xff] }
  0xfb   :  { %v1133_v43 = vadd.f32 %v1132_v42, %v1131_v39  ;;  %v699_v39 = vld [vmem:[%s2177_s4 + $0x1c0] sm:$0xff]  ;;  %v701_v42 = vld [vmem:[%s2177_s4 + $0x1d0] sm:$0xff] }
  0xfd   :  { %v332_v44 = vadd.f32 %v1133_v43, %v1098_v41  ;;  %v1393_v41 = vpack.c.bf16 %v699_v39, %v691_v38  ;;  %v648_v43 = vld [vmem:[%s2177_s4 + $0x28] sm:$0xff] }
 0x118   :  { %v1166_v45 = vpop.f32.mrb[2].mxu0 }
 0x119   :  { %v1167_v46 = vpop.f32.mrb[3].mxu0  ;;  %v1201_v47 = vpop.f32.mrb[2].mxu1 }
 0x11a   :  { %v1168_v48 = vadd.f32 %v1167_v46, %v1166_v45  ;;  %v1202_v49 = vpop.f32.mrb[3].mxu1  ;;  %v1409_v45 = vpack.c.bf16 %v701_v42, %v693_v40 }
 0x11b   :  { %v1203_v50 = vadd.f32 %v1202_v49, %v1201_v47  ;;  %v650_v47 = vld [vmem:[%s2177_s4 + $0x38] sm:$0xff] }
 0x11c   :  { %v402_v51 = vadd.f32 %v1168_v48, %v332_v44  ;;  %v656_v44 = vld [vmem:[%s2177_s4 + $0x68] sm:$0xff]  ;;  %v658_v48 = vld [vmem:[%s2177_s4 + $0x78] sm:$0xff] }
 0x11d   :  { %v1411_v46 = vpack.c.bf16 %v656_v44, %v648_v43  ;;  %v1427_v49 = vpack.c.bf16 %v658_v48, %v650_v47 }
 0x11e   :  { %v472_v52 = vadd.f32 %v1203_v50, %v402_v51 }
 0x120   :  { %1232 = vmatmul.mubr.msk.f32.vlgmr.msra.gmra.mrb[4].mxu0 %vm483_vm2, %v472_v52 }
 0x121   :  { %845 = vmatprep.mubr.f32.mxu0 %v1481_v36  ;;  %1398 = vmatpush1.bf16.msra.mxu0 %v1397_v3  ;;  %v1415_v3 = vpack.c.bf16 %v672_v60, %v664_v59 }
 0x122   :  { %1400 = vmatprep.subr.bf16.mxu0 %v1399_v11  ;;  %v690_v11 = vld [vmem:[%s2177_s4 + $0x178] sm:$0xff] }
 0x123   :  { %v1435_v18 = vpack.c.bf16 %v690_v11, %v682_v10 }
 0x125   :  { %1402 = vmatpush1.bf16.msra.mxu0 %v1401_v16  ;;  %v687_v16 = vld [vmem:[%s2177_s4 + $0x160] sm:$0xff] }
 0x126   :  { %1404 = vmatprep.subr.bf16.mxu0 %v1403_v25  ;;  %v706_v25 = vld [vmem:[%s2177_s4 + $0x1f8] sm:$0xff] }
 0x129   :  { %1406 = vmatpush1.bf16.msra.mxu0 %v1405_v30  ;;  %v1439_v30 = vpack.c.bf16 %v706_v25, %v698_v24 }
 0x12a   :  { %1408 = vmatprep.subr.bf16.mxu0 %v1407_v37 }
 0x12d   :  { %1410 = vmatpush1.bf16.msra.mxu0 %v1409_v45 }
 0x12e   :  { %1428 = vmatprep.subr.bf16.mxu0 %v1427_v49 }
 0x1f3   :  { %v553_v53 = vpop.f32.mrb[4].mxu0 }
 0x1f4   :  { %v557_v54 = vmax.f32 %v553_v53, 0.0  ;;  %v1233_v55 = vpop.f32.mrb[5].mxu0 }
 0x1f5   :  { %v647_v55 = vld [vmem:[%s2177_s4 + $0x20] sm:$0xff] }
 0x1f6   :  { %1237 = vmatmul.mubr.msk.f32.vlgmr.msra.gmra.mrb[4].mxu1 %vm559_vm3, %v557_v54  ;;  %v1413_v63 = vpack.c.bf16 %v655_v56, %v647_v55 }
 0x1f7   :  { %774 = vmatprep.mubr.f32.mxu1 %v1481_v36  ;;  %1382 = vmatpush1.bf16.msra.mxu1 %v1381_v0  ;;  %v1429_v0 = vpack.c.bf16 %v657_v58, %v649_v57 }
 0x1f8   :  { %1384 = vmatprep.subr.bf16.mxu1 %v1383_v7  ;;  %v680_v7 = vld [vmem:[%s2177_s4 + $0x128] sm:$0xff] }
 0x1f9   :  { %v1419_v17 = vpack.c.bf16 %v688_v9, %v680_v7 }
 0x1fb   :  { %1386 = vmatpush1.bf16.msra.mxu1 %v1385_v12  ;;  %v1417_v12 = vpack.c.bf16 %v671_v2, %v663_v1 }
 0x1fc   :  { %1388 = vmatprep.subr.bf16.mxu1 %v1387_v20  ;;  %v689_v20 = vld [vmem:[%s2177_s4 + $0x170] sm:$0xff] }
 0x1fd   :  { %v1437_v27 = vpack.c.bf16 %v689_v20, %v681_v19 }
 0x1ff   :  { %1390 = vmatpush1.bf16.msra.mxu1 %v1389_v26  ;;  %v1421_v26 = vpack.c.bf16 %v687_v16, %v679_v15 }
 0x200   :  { %1392 = vmatprep.subr.bf16.mxu1 %v1391_v35 }
 0x203   :  { %1394 = vmatpush1.bf16.msra.mxu1 %v1393_v41 }
 0x204   :  { %1412 = vmatprep.subr.bf16.mxu1 %v1411_v46 }
 0x2c9   :  { %v633_v50 = vpop.f32.mrb[4].mxu1 }
 0x2ca   :  { %v1059_v51 = vmul.f32 -1.442695, %v633_v50  ;;  %v1238_v52 = vpop.f32.mrb[5].mxu1 }
 0x2cc   :  { %1450 = vpow2.f32 %v1059_v51 }
 0x2d6   :  { %v1451_v53 = vpop.eup %1450 }
 0x2d7   :  { %v640_v54 = vadd.f32 1.0, %v1451_v53 }
 0x2d9   :  { %1452 = vrcp.f32 %v640_v54 }
 0x2e3   :  { %v1453_v8 = vpop.eup %1452 }
 0x2e4   :  { %1060 = vmatmul.mubr.msk.f32.vlgmr.msra.gmra.mrb[6].mxu1 %vm483_vm2, %v1453_v8  ;;  %1061 = vmatmul.mubr.msk.f32.vlgmr.msra.gmra.mrb[6].mxu0 %vm483_vm2, %v1453_v8 }
 0x2e5   :  { %1414 = vmatpush1.bf16.msra.mxu1 %v1413_v63  ;;  %1430 = vmatpush1.bf16.msra.mxu0 %v1429_v0 }
 0x2e6   :  { %1416 = vmatprep.subr.bf16.mxu1 %v1415_v3  ;;  %1432 = vmatprep.subr.bf16.mxu0 %v1431_v4 }
 0x2e7   :  { %916 = vmatprep.mubr.f32.mxu1 %v1481_v36  ;;  %987 = vmatprep.mubr.f32.mxu0 %v1481_v36  ;;  %v697_v36 = vld [vmem:[%s2177_s4 + $0x1b0] sm:$0xff]  ;;  %s1482_s4 = smov [#allocation2]  }
 0x2e8   :  { %v1441_v35 = vpack.c.bf16 %v705_v33, %v697_v36  ;;  %s1048_s26 = sshll.u32 %s1482_s4, 4  ;;  %s1049_s26 = int_to_ptr.vmem [resolvable:$true] %s1048_s26 }
 0x2e9   :  { %1418 = vmatpush1.bf16.msra.mxu1 %v1417_v12  ;;  %1434 = vmatpush1.bf16.msra.mxu0 %v1433_v14  ;;  %s1454_s27 = scalar_lea.vmem %s1049_s26, 256  ;;  %p1459_p1 = scmp.lt.s32.totalorder %s1049_s26, %s1049_s26 }
 0x2ea   :  { %1420 = vmatprep.subr.bf16.mxu1 %v1419_v17  ;;  %1436 = vmatprep.subr.bf16.mxu0 %v1435_v18  ;;  %p1455_p0 = scmp.ne.s32.totalorder %s1049_s26, %s1454_s27  ;;  %p1460_p2 = scmp.lt.s32.totalorder %s1454_s27, %s1454_s27 }
 0x2ec   :  { %p1461_p3 = por %p1460_p2, %p1459_p1 }
 0x2ed   :  { %1422 = vmatpush1.bf16.msra.mxu1 %v1421_v26  ;;  %1438 = vmatpush1.bf16.msra.mxu0 %v1437_v27 }
 0x2ee   :  { %1424 = vmatprep.subr.bf16.mxu1 %v1423_v29  ;;  %1440 = vmatprep.subr.bf16.mxu0 %v1439_v30  ;;  %p1462_p4 = pnand %p1461_p3, %p1455_p0 }
 0x2f1   :  { %1426 = vmatpush1.bf16.msra.mxu1 %v1425_v34  ;;  %1442 = vmatpush1.bf16.msra.mxu0 %v1441_v35 }
 0x2f4   :  { %1062 = vmatmul.mubr.msk.f32.vlgmr.msra.gmra.mrb[8].mxu1 %vm483_vm2, %v1453_v8  ;;  %1063 = vmatmul.mubr.msk.f32.vlgmr.msra.gmra.mrb[8].mxu0 %vm483_vm2, %v1453_v8 }
 0x3b7   :  { %v776_v37 = vpop.f32.mrb[6].mxu1  ;;  %v847_v38 = vpop.f32.mrb[6].mxu0 }
 0x3b8   :  { %v778_v39 = vpop.f32.mrb[7].mxu1  ;;  %v849_v40 = vpop.f32.mrb[7].mxu0 }
 0x3b9   :  { %v1002_v41 = vcombine.low %v776_v37, %v778_v39  ;;  %v1003_v42 = vcombine.low %v847_v38, %v849_v40 }
 0x3bb   :  { %v1010_v43 = vrot.slane %v1002_v41, %v1663_v13  ;;  %v1017_v44 = vrot.slane %v1003_v42, %v1663_v13 }
 0x3bd   :  { %v1018_v45 = vcombine.low %v1010_v43, %v1017_v44 }
 0x3bf   :  { %v1038_v46 = vmul.f32 %v1018_v45, %v1683_v22 }
 0x3c1   :  { %1040 = vst [vmem:[#allocation2] sm:$0xff] %v1038_v46 }
 0x3c7   :  { %v918_v47 = vpop.f32.mrb[8].mxu1  ;;  %v989_v48 = vpop.f32.mrb[8].mxu0 }
 0x3c8   :  { %v920_v49 = vpop.f32.mrb[9].mxu1  ;;  %v991_v50 = vpop.f32.mrb[9].mxu0 }
 0x3c9   :  { %v1019_v51 = vcombine.low %v918_v47, %v920_v49  ;;  %v1020_v52 = vcombine.low %v989_v48, %v991_v50 }
 0x3cb   :  { %v1027_v53 = vrot.slane %v1019_v51, %v1663_v13  ;;  %v1034_v54 = vrot.slane %v1020_v52, %v1663_v13 }
 0x3cd   :  { %v1035_v55 = vcombine.low %v1027_v53, %v1034_v54 }
 0x3cf   :  { %v1039_v56 = vmul.f32 %v1035_v55, %v1828_v32 }
 0x3d1   :  { %1041 = vst [vmem:[#allocation2 + $0x8] sm:$0xff] %v1039_v56 }
 0x3d2   :  { %1465 = shalt.err (!%p1462_p4)
}
 0x3d3   :  { %s1466_s29 = scalar_lea.hbm %s2178_s5, 256 }
 0x3d4   :  { %p1467_p5 = scmp.ne.s32.totalorder %s2178_s5, %s1466_s29  ;;  %p1470_p6 = scmp.lt.u32.totalorder %s1466_s29, %s2178_s5 }
 0x3d6   :  { %p1472_p7 = pnand %p1470_p6, %p1467_p5 }
 0x3d8   :  { %1475 = shalt.err (!%p1472_p7)
}
 0x3d9   :  { %1051 = dma.vmem_to_hbm [thread:$0]  %s1049_s26, 256, %s2178_s5, [#allocation3]  }
 0x3da   :  { %1476 = dma.done.wait [#allocation3], 256  }
 0x3db   :  { %1477 = vsyncadd [#allocation3], 4294967040 }
 0x3dc   :  { %1055 = vsyncpa [#allocation3], 1 }

</bundles_post_ra>
